<compile_context>
chip_gen: v5e
topology: v5e:2x2
jax: 0.10.0
libtpu: 0.0.40
codegen_flags: <defaults>
</compile_context>

<pallas_src>
import functools

import jax
import jax.numpy as jnp
from jax import lax
from jax.experimental import pallas as pl
from jax.experimental.pallas import tpu as pltpu

_MIB = 1024 * 1024


def _focal_loss_kernel(logits_ref, labels_ref, alpha_ref, loss_ref, *,
                       gamma, gamma_is_int, ignore_index, batch_size, block_b,
                       keep_bf16):
    # logits_ref : (TB, C)  float (f32 or bf16)
    # labels_ref : (TB, 1)  int32
    # alpha_ref  : (C,  1)  float32 (per-class weights; ones when alpha=None)
    # loss_ref   : (TB, 1)  float32
    x = logits_ref[...]
    if not (keep_bf16 and x.dtype == jnp.bfloat16):
        x = x.astype(jnp.float32)                               # f32 compute path
    labels = labels_ref[...]                                    # (TB, 1)
    alpha_col = alpha_ref[...].astype(jnp.float32)              # (C,  1)

    # Row validity: rows past the true batch (boundary block of a ragged grid)
    # and rows whose label equals ignore_index contribute zero loss.
    row_ids = (pl.program_id(0) * block_b
               + lax.broadcasted_iota(jnp.int32, labels.shape, 0))  # (TB, 1)
    in_range = row_ids < batch_size
    mask = jnp.logical_and(in_range, labels != ignore_index)    # (TB, 1) bool
    valid_labels = jnp.where(mask, labels, 0)                   # (TB, 1)

    # One-hot built once; bool view feeds the target select, f32 view feeds the
    # MXU alpha gather (MXU is otherwise idle here).
    col_ids = lax.broadcasted_iota(jnp.int32, x.shape, 1)       # (TB, C)
    onehot = col_ids == valid_labels                            # (TB, C) bool
    onehot_f = onehot.astype(jnp.float32)                       # (TB, C) f32

    # Log-softmax gather on shifted logits: logp_t = (x_t - m) - log(denom).
    m = jnp.max(x, axis=-1, keepdims=True)                      # (TB, 1) native
    xm = x - m                                                  # (TB, C) native
    e = jnp.exp(xm.astype(jnp.float32))                         # (TB, C) f32 EUP
    denom = jnp.sum(e, axis=-1, keepdims=True)                  # (TB, 1) f32

    t_shift = jnp.sum(jnp.where(onehot, xm, 0), axis=-1,
                      keepdims=True).astype(jnp.float32)        # (TB, 1) = x_t - m
    alpha_t = jnp.dot(onehot_f, alpha_col,
                      preferred_element_type=jnp.float32)       # (TB, 1) via MXU

    logp_t = t_shift - jnp.log(denom)                           # log p_t <= 0
    p_t = jnp.exp(logp_t)                                       # (TB, 1)
    one_minus = jnp.maximum(1.0 - p_t, 0.0)

    if gamma_is_int:
        focal_w = lax.integer_pow(one_minus, int(gamma))
    else:
        # Guard 0**gamma (p_t == 1) so no NaN has to be clamped away later.
        safe = jnp.maximum(one_minus, jnp.finfo(jnp.float32).tiny)
        focal_w = jnp.where(one_minus > 0.0,
                            jnp.exp(gamma * jnp.log(safe)), 0.0)

    loss = -alpha_t * focal_w * logp_t                          # (TB, 1)
    loss = jnp.where(mask, loss, 0.0)
    # Parity with the PyTorch module's final non-finite clamp (cheap: TBx1).
    loss = jnp.where(jnp.isfinite(loss), loss, 0.0)
    loss_ref[...] = loss


def _vmem_capacity_bytes():
    try:
        return int(pltpu.get_tpu_info().vmem_capacity_bytes)
    except Exception:
        return 64 * _MIB        # conservative (v7x-sized) fallback


def _sublane_multiple(dtype):
    # Native sublane packing: 8 rows (f32), 16 (bf16), 32 (int8/fp8).
    return {1: 32, 2: 16, 4: 8}.get(jnp.dtype(dtype).itemsize, 8)


def _bf16_vpu_native():
    """True on generations with bf16-native VALUs (v6e/v7x); False on v2-v5."""
    try:
        kind = jax.devices()[0].device_kind.lower()
    except Exception:
        return False
    return not any(tag in kind for tag in ("v2", "v3", "v4", "v5"))


def _choose_block_b(B, C, dtype, vmem_cap):
    """Largest batch tile that fits a generation-aware VMEM working-set budget.

    Per-row bytes: double-buffered logits tiles (2*itemsize per element) plus
    the in-kernel f32 intermediates (f32 copy / exp / one-hot / select temps,
    ~16 B per element) plus ~4 KiB/row for the lane-padded (TB,1) label/output
    buffers and live (TB,1) column temporaries.
    """
    itemsize = jnp.dtype(dtype).itemsize
    sub = _sublane_multiple(dtype)
    budget = 24 * _MIB if vmem_cap <= 80 * _MIB else 40 * _MIB
    per_row = C * (2 * itemsize + 16) + 4096
    cand = budget // max(per_row, 1)
    cand = max(sub, (cand // sub) * sub)
    block_b = B if cand >= B else cand
    # Guarantee >= 2 grid steps whenever the batch allows it so the "parallel"
    # batch axis shards across both TensorCores on v7x; on single-TC v5e/v6e
    # the extra grid step only costs ~0.35 us.
    if block_b >= B and B > sub:
        half = -(-B // 2)                 # ceil(B/2)
        half = -(-half // sub) * sub      # round up to the sublane multiple
        if half < B:
            block_b = half
    return block_b


def focal_loss(logits, labels, *, gamma=2.0, alpha=None, reduction='none',
               ignore_index=-100, block_b=None, bf16_native=None):
    """Pallas TPU implementation of FocalLoss.forward.

    logits: [B, C] float array; labels: [B] int array.
    Returns per-sample loss [B] (reduction='none'), or a scalar for
    'mean'/'sum'.
    """
    B, C = logits.shape
    if alpha is None:
        alpha = jnp.ones((C,), dtype=jnp.float32)   # matches the PyTorch default
    alpha_col = jnp.asarray(alpha, dtype=jnp.float32).reshape(C, 1)
    labels2d = labels.astype(jnp.int32).reshape(B, 1)

    vmem_cap = _vmem_capacity_bytes()
    if block_b is None:
        block_b = _choose_block_b(B, C, logits.dtype, vmem_cap)
    block_b = max(1, min(int(block_b), B))
    vmem_limit = 48 * _MIB if vmem_cap <= 80 * _MIB else 80 * _MIB

    if bf16_native is None:
        bf16_native = _bf16_vpu_native()
    keep_bf16 = bool(bf16_native) and logits.dtype == jnp.bfloat16

    gamma = float(gamma)
    gamma_is_int = gamma.is_integer() and gamma >= 0.0

    kernel = functools.partial(
        _focal_loss_kernel,
        gamma=gamma,
        gamma_is_int=gamma_is_int,
        ignore_index=int(ignore_index),
        batch_size=B,
        block_b=block_b,
        keep_bf16=keep_bf16)

    itemsize = jnp.dtype(logits.dtype).itemsize
    cost = pl.CostEstimate(
        flops=10 * B * C,
        transcendentals=B * C,
        bytes_accessed=B * C * itemsize + 2 * B * 4 + C * 4)

    loss2d = pl.pallas_call(
        kernel,
        out_shape=jax.ShapeDtypeStruct((B, 1), jnp.float32),
        grid_spec=pltpu.PrefetchScalarGridSpec(
            num_scalar_prefetch=0,
            grid=(pl.cdiv(B, block_b),),
            in_specs=[
                pl.BlockSpec((block_b, C), lambda i: (i, 0)),
                pl.BlockSpec((block_b, 1), lambda i: (i, 0)),
                pl.BlockSpec((C, 1), lambda i: (0, 0)),
            ],
            out_specs=pl.BlockSpec((block_b, 1), lambda i: (i, 0)),
        ),
        compiler_params=pltpu.CompilerParams(
            dimension_semantics=("parallel",),
            vmem_limit_bytes=vmem_limit),
        cost_estimate=cost,
    )(logits, labels2d, alpha_col)

    loss = loss2d[:, 0]
    if reduction == 'mean':
        return jnp.mean(loss)
    elif reduction == 'sum':
        return jnp.sum(loss)
    return loss


def _focal_loss_ref(logits, labels, gamma=2.0, alpha=None, ignore_index=-100):
    # Pure-JAX reference mirroring the PyTorch forward (reduction='none'),
    # using log-softmax for the log(p_t) term.
    B, C = logits.shape
    if alpha is None:
        alpha = jnp.ones((C,), jnp.float32)
    mask = labels != ignore_index
    valid = jnp.where(mask, labels, 0)
    logp = jax.nn.log_softmax(logits.astype(jnp.float32), axis=-1)
    logp_t = logp[jnp.arange(B), valid]
    p_t = jnp.exp(logp_t)
    alpha_t = jnp.asarray(alpha, jnp.float32)[valid]
    loss = -alpha_t * (1.0 - p_t) ** gamma * logp_t
    loss = jnp.where(mask, loss, 0.0)
    loss = jnp.where(jnp.isfinite(loss), loss, 0.0)
    return loss


if __name__ == "__main__":
    key = jax.random.PRNGKey(0)

    # Case 1: f32 logits, integer gamma, auto tiling (auto-split into >=2 grid
    # steps so the parallel axis can use both v7x TensorCores).
    B, C = 16, 32
    k1, k2 = jax.random.split(key)
    logits = jax.random.normal(k1, (B, C), dtype=jnp.float32)
    labels = jax.random.randint(k2, (B,), 0, C, dtype=jnp.int32)
    labels = labels.at[3].set(-100).at[11].set(-100)   # ignore_index samples

    out = jax.block_until_ready(focal_loss(logits, labels, gamma=2.0))
    ref = _focal_loss_ref(logits, labels, gamma=2.0)
    assert out.shape == (B,)
    assert jnp.allclose(out, ref, atol=1e-5, rtol=1e-5), (out, ref)

    # Case 2: bf16 logits, ragged batch — auto block_b rounds to bf16's native
    # sublane multiple (16) and the boundary block is masked in-kernel. The
    # bf16-native pre-exp path (v6e/v7x) trades ~bf16-level precision.
    B2, C2 = 20, 128
    k3, k4 = jax.random.split(k2)
    logits2 = jax.random.normal(k3, (B2, C2), dtype=jnp.float32).astype(jnp.bfloat16)
    labels2 = jax.random.randint(k4, (B2,), 0, C2, dtype=jnp.int32)
    labels2 = labels2.at[0].set(-100)
    out2 = jax.block_until_ready(focal_loss(logits2, labels2, gamma=2.0))
    ref2 = _focal_loss_ref(logits2.astype(jnp.float32), labels2, gamma=2.0)
    assert out2.shape == (B2,)
    assert jnp.allclose(out2, ref2, atol=3e-2, rtol=3e-2), (out2, ref2)

    # Case 3: per-class alpha, non-integer gamma, mean reduction, explicit tile.
    alpha_vec = jnp.linspace(0.5, 1.5, C).astype(jnp.float32)
    out3 = jax.block_until_ready(
        focal_loss(logits, labels, gamma=1.5, alpha=alpha_vec, reduction='mean',
                   block_b=8))
    ref3 = jnp.mean(_focal_loss_ref(logits, labels, gamma=1.5, alpha=alpha_vec))
    assert jnp.allclose(out3, ref3, atol=1e-4, rtol=1e-4), (out3, ref3)

    print("KERNEL_OK")
</pallas_src>

<mosaic_0001>
module attributes {stable_mosaic.version = 11 : i64} {
  func.func @_focal_loss_kernel(%arg0: i32, %arg1: memref<8x32xf32, #tpu.memory_space<vmem>>, %arg2: memref<8x1xi32, #tpu.memory_space<vmem>>, %arg3: memref<32x1xf32, #tpu.memory_space<vmem>>, %arg4: memref<8x1xf32, #tpu.memory_space<vmem>>) attributes {dimension_semantics = [#tpu.dimension_semantics<parallel>], iteration_bounds = array<i64: 2>, scalar_prefetch = 0 : i64, scratch_operands = 0 : i64, tpu.core_type = #tpu.core_type<tc>, window_params = [{transform_indices = @transform_0, window_bounds = array<i64: 8, 32>}, {transform_indices = @transform_1, window_bounds = array<i64: 8, 1>}, {pipeline_mode = #tpu.pipeline_mode<synchronous>, transform_indices = @transform_2, window_bounds = array<i64: 32, 1>}, {transform_indices = @transform_3, window_bounds = array<i64: 8, 1>}]} {
    %c0 = arith.constant 0 : index
    %c0_0 = arith.constant 0 : index
    %0 = vector.load %arg1[%c0, %c0_0] : memref<8x32xf32, #tpu.memory_space<vmem>>, vector<8x32xf32>
    %c0_1 = arith.constant 0 : index
    %c0_2 = arith.constant 0 : index
    %1 = vector.load %arg2[%c0_1, %c0_2] : memref<8x1xi32, #tpu.memory_space<vmem>>, vector<8x1xi32>
    %c0_3 = arith.constant 0 : index
    %c0_4 = arith.constant 0 : index
    %2 = vector.load %arg3[%c0_3, %c0_4] : memref<32x1xf32, #tpu.memory_space<vmem>>, vector<32x1xf32>
    %c8_i32 = arith.constant 8 : i32
    %3 = arith.muli %arg0, %c8_i32 : i32
    %4 = tpu.iota {dimensions = array<i32: 0>} : vector<8x1xi32>
    %5 = vector.broadcast %3 : i32 to vector<8x1xi32>
    %6 = arith.addi %5, %4 : vector<8x1xi32>
    %c16_i32 = arith.constant 16 : i32
    %7 = vector.broadcast %c16_i32 : i32 to vector<8x1xi32>
    %8 = arith.cmpi slt, %6, %7 : vector<8x1xi32>
    %c-100_i32 = arith.constant -100 : i32
    %9 = vector.broadcast %c-100_i32 : i32 to vector<8x1xi32>
    %10 = arith.cmpi ne, %1, %9 : vector<8x1xi32>
    %11 = arith.andi %8, %10 : vector<8x1xi1>
    %c0_i32 = arith.constant 0 : i32
    %12 = vector.broadcast %c0_i32 : i32 to vector<8x1xi32>
    %13 = arith.select %11, %1, %12 : vector<8x1xi1>, vector<8x1xi32>
    %14 = tpu.iota {dimensions = array<i32: 1>} : vector<8x32xi32>
    %15 = vector.broadcast %13 : vector<8x1xi32> to vector<8x32xi32>
    %16 = arith.cmpi eq, %14, %15 : vector<8x32xi32>
    %17 = arith.extui %16 : vector<8x32xi1> to vector<8x32xi32>
    %18 = arith.sitofp %17 : vector<8x32xi32> to vector<8x32xf32>
    %cst = arith.constant dense<0xFF800000> : vector<8xf32>
    %19 = vector.multi_reduction <maximumf>, %0, %cst [1] : vector<8x32xf32> to vector<8xf32>
    %20 = vector.shape_cast %19 : vector<8xf32> to vector<8x1xf32>
    %21 = vector.broadcast %20 : vector<8x1xf32> to vector<8x32xf32>
    %22 = arith.subf %0, %21 : vector<8x32xf32>
    %23 = math.exp %22 : vector<8x32xf32>
    %cst_5 = arith.constant dense<0.000000e+00> : vector<8xf32>
    %24 = vector.multi_reduction <add>, %23, %cst_5 [1] : vector<8x32xf32> to vector<8xf32>
    %25 = vector.shape_cast %24 : vector<8xf32> to vector<8x1xf32>
    %c0_i32_6 = arith.constant 0 : i32
    %26 = arith.sitofp %c0_i32_6 : i32 to f32
    %27 = vector.broadcast %26 : f32 to vector<8x32xf32>
    %28 = arith.select %16, %22, %27 : vector<8x32xi1>, vector<8x32xf32>
    %cst_7 = arith.constant dense<0.000000e+00> : vector<8xf32>
    %29 = vector.multi_reduction <add>, %28, %cst_7 [1] : vector<8x32xf32> to vector<8xf32>
    %30 = vector.shape_cast %29 : vector<8xf32> to vector<8x1xf32>
    %cst_8 = arith.constant dense<0.000000e+00> : vector<8x1xf32>
    %31 = tpu.matmul %18, %2, %cst_8 {dimension_numbers = #tpu.dot_dimension_numbers<[1], [0], [0], [1], [0, 0, 1, 1], [], []>} : vector<8x32xf32>, vector<32x1xf32>, vector<8x1xf32> -> vector<8x1xf32>
    %32 = math.log %25 : vector<8x1xf32>
    %33 = arith.subf %30, %32 : vector<8x1xf32>
    %34 = math.exp %33 : vector<8x1xf32>
    %cst_9 = arith.constant 1.000000e+00 : f32
    %35 = vector.broadcast %cst_9 : f32 to vector<8x1xf32>
    %36 = arith.subf %35, %34 : vector<8x1xf32>
    %cst_10 = arith.constant 0.000000e+00 : f32
    %37 = vector.broadcast %cst_10 : f32 to vector<8x1xf32>
    %38 = arith.maximumf %36, %37 : vector<8x1xf32>
    %39 = arith.mulf %38, %38 : vector<8x1xf32>
    %cst_11 = arith.constant 0.000000e+00 : f32
    %40 = vector.broadcast %cst_11 : f32 to vector<8x1xf32>
    %41 = arith.subf %40, %31 : vector<8x1xf32>
    %42 = arith.mulf %41, %39 : vector<8x1xf32>
    %43 = arith.mulf %42, %33 : vector<8x1xf32>
    %cst_12 = arith.constant 0.000000e+00 : f32
    %44 = vector.broadcast %cst_12 : f32 to vector<8x1xf32>
    %45 = arith.select %11, %43, %44 : vector<8x1xi1>, vector<8x1xf32>
    %46 = tpu.weird %45 : vector<8x1xf32> -> vector<8x1xi1>
    %cst_13 = arith.constant dense<true> : vector<8x1xi1>
    %47 = arith.xori %46, %cst_13 : vector<8x1xi1>
    %cst_14 = arith.constant 0.000000e+00 : f32
    %48 = vector.broadcast %cst_14 : f32 to vector<8x1xf32>
    %49 = arith.select %47, %45, %48 : vector<8x1xi1>, vector<8x1xf32>
    %c0_15 = arith.constant 0 : index
    %c0_16 = arith.constant 0 : index
    %50 = vector.load %arg4[%c0_15, %c0_16] : memref<8x1xf32, #tpu.memory_space<vmem>>, vector<8x1xf32>
    tpu.vector_store %arg4[%c0_15, %c0_16], %49 {strides = array<i32>} : memref<8x1xf32, #tpu.memory_space<vmem>>, vector<8x1xf32>,
    return
  }
  func.func @transform_0(%arg0: i32) -> (i32, i32) {
    %c0_i32 = arith.constant 0 : i32
    %c0_i32_0 = arith.constant 0 : i32
    return %arg0, %c0_i32 : i32, i32
  }
  func.func @transform_1(%arg0: i32) -> (i32, i32) {
    %c0_i32 = arith.constant 0 : i32
    %c0_i32_0 = arith.constant 0 : i32
    return %arg0, %c0_i32 : i32, i32
  }
  func.func @transform_2(%arg0: i32) -> (i32, i32) {
    %c0_i32 = arith.constant 0 : i32
    %c0_i32_0 = arith.constant 0 : i32
    %c0_i32_1 = arith.constant 0 : i32
    return %c0_i32, %c0_i32_0 : i32, i32
  }
  func.func @transform_3(%arg0: i32) -> (i32, i32) {
    %c0_i32 = arith.constant 0 : i32
    %c0_i32_0 = arith.constant 0 : i32
    return %arg0, %c0_i32 : i32, i32
  }
}

</mosaic_0001>

<bundles_post_ra>
// kernel: tpu_custom_call.1
= control target key start
LH: loop header
LB: loop body
LE: loop exit
PB: predicated region body
PF: predicated region fallthrough
CT: control target
= control target key end

     0   :  { %s387_s12 = smov 0   ;;  %s436_s0 = inlined_call_operand.vmem [shape: f32[16,32], index: 0, kind: input, shape index: {}]   ;;  %s437_s1 = inlined_call_operand.vmem [shape: s32[16,1], index: 1, kind: input, shape index: {}]   ;;  %s438_s2 = inlined_call_operand.vmem [shape: f32[32,1], index: 2, kind: input, shape index: {}]   ;;  %s439_s3 = inlined_call_operand.vmem [shape: f32[16,1], index: 3, kind: output, shape index: {}]  }
   0x1 LB: > { %s325_s13 = sadd.s32 4294967295, %s362_s12   ;;  %p329_p0 = scmp.ge.s32.totalorder %s362_s12, 1  ;;  %s362_s12 = sphi %s387_s12, %s13_s12  }
   0x2   : > { %p145_p1 = scmp.lt.s32.totalorder %s362_s12, 3 }
   0x4   : > { %p146_p2 = pnand %p329_p0, %p145_p1 }
   0x5   : > { %p171_p3 = scmp.lt.s32.totalorder (!%p146_p2), %s325_s13, 1  ;;  %s333_s14 = sshll.u32 (!%p146_p2), %s325_s13, 3 }
   0x6   : > { %149 = sbr.rel (%p146_p2) target bundleno = 341 (0x155), region = 32 }
   0xb   : > { %v190_v0 = vlaneseq  ;;  %v364_v1 = vmov 0   ;;  %v192_v2 = vstv %s333_s14  ;;  %s443_s13 = smov (!%p171_p3, %s325_s13), 1  ;;  %v188_v8 = vld [vmem:[%s438_s2 + $0x18] sm:$0xff]  ;;  %v187_v9 = vld [vmem:[%s438_s2 + $0x10] sm:$0xff]  ;;  %v186_v10 = vld [vmem:[%s438_s2 + $0x8] sm:$0xff]  ;;  %vm206_vm3 = vcmask 261120  }
   0xc   : > { %349 = vset.pattern.permute.xlu0 %v364_v1  ;;  %s395_s15 = sshll.u32 %s443_s13, 3  ;;  %235 = vmatpush.msra.mxu0 %v188_v8  ;;  %v185_v13 = vld [vmem:[%s438_s2] sm:$0xff]  ;;  %v365_v16 = vmov 0.0   ;;  %vm258_vm5 = vcmask 7168   ;;  %vm366_vm7 = vmmov 1  }
   0xd   : > { %v191_v3 = vshrl.u32 %v190_v0, 7  ;;  %s178_s18 = scalar_lea.vmem %s437_s1, %s395_s15  ;;  %s174_s27 = scalar_lea.vmem %s436_s0, %s395_s15  ;;  %v199_v14 = vand.u32 127, %v190_v0 }
   0xe   : > { %v184_v5 = vld [vmem:[%s178_s18] sm:$0xff]  ;;  %236 = vmatpush.msra.mxu0 %v187_v9  ;;  %s182_s5 = scalar_lea.vmem %s439_s3, %s395_s15 }
   0xf   : > { %v193_v4 = vadd.s32 %v192_v2, %v191_v3  ;;  %vm195_vm1 = vcmp.ne.s32.totalorder %v184_v5, 4294967196  ;;  %v183_v11 = vld [vmem:[%s174_s27] sm:$0xff] }
  0x10   : > { %237 = vmatpush.msra.mxu0 %v186_v10  ;;  %v207_v12 = vsel %vm206_vm3, %v183_v11, -inf }
  0x11   : > { %vm194_vm0 = vcmp.lt.s32.totalorder %v193_v4, 16 }
  0x12   : > { %vm401_vm2 = vmand %vm194_vm0, %vm195_vm1  ;;  %238 = vmatpush.msra.mxu0 %v185_v13 }
  0x13   : > { %v197_v7 = vsel %vm401_vm2, %v184_v5, 0 }
  0x14   : > { %201 = vperm.xlu0 %349, %v197_v7  }
  0x3e   : > { %208 = vmax.xlane.f32.xlu0 %v207_v12 }
  0x86   : > { %v202_v15 = vpop.permute.xlu0 %201 }
  0x87   : > { %vm203_vm4 = vcmp.eq.s32.totalorder %v199_v14, %v202_v15 }
  0x88   : > { %v334_v17 = vsel %vm203_vm4, 1.0, %v365_v16 }
  0x89   : > { %335 = vmatmul.msk.f32.vlgmr.msra.gmra.mxu0 %vm206_vm3, %v334_v17 }
  0xb1   : > { %v209_v18 = vpop.xlane.xlu0 %208 }
  0xb2   : > { %v210_v19 = vsub.f32 %v183_v11, %v209_v18 }
  0xb4   : > { %v211_v20 = vmul.f32 1.442695, %v210_v19  ;;  %v216_v23 = vsel %vm203_vm4, %v210_v19, 0.0 }
  0xb5   : > { %v217_v24 = vsel %vm206_vm3, %v216_v23, 0.0 }
  0xb6   : > { %350 = vpow2.f32 %v211_v20 }
  0xbc   : > { %v351_v21 = vpop.eup %350 }
  0xbd   : > { %v213_v22 = vsel %vm206_vm3, %v351_v21, 0.0 }
  0xbe   : > { %214 = vadd.xlane.f32.xlu1 %v213_v22 }
  0xc6   : > { %218 = vadd.xlane.f32.xlu1 %v217_v24 }
 0x106   : > { %v240_v33 = vpop.f32.mrf.mxu0 }
 0x107   : > { %v251_v35 = vsub.f32 0.0, %v240_v33 }
 0x131   : > { %v215_v25 = vpop.xlane.xlu1 %214 }
 0x132   : > { %352 = vlog2.f32 %v215_v25 }
 0x138   : > { %v353_v26 = vpop.eup %352 }
 0x139   : > { %v244_v27 = vmul.f32 0.6931472, %v353_v26  ;;  %v219_v28 = vpop.xlane.xlu1 %218 }
 0x13b   : > { %v245_v29 = vsub.f32 %v219_v28, %v244_v27 }
 0x13d   : > { %v246_v30 = vmul.f32 1.442695, %v245_v29 }
 0x13f   : > { %354 = vpow2.f32 %v246_v30 }
 0x145   : > { %v355_v31 = vpop.eup %354 }
 0x146   : > { %v248_v32 = vsub.f32 1.0, %v355_v31 }
 0x148   : > { %v249_v34 = vmax.f32 %v248_v32, 0.0 }
 0x14a   : > { %v250_v36 = vmul.f32 %v249_v34, %v249_v34 }
 0x14c   : > { %v252_v37 = vmul.f32 %v251_v35, %v250_v36 }
 0x14e   : > { %v253_v38 = vmul.f32 %v252_v37, %v245_v29 }
 0x150   : > { %v254_v39 = vsel %vm401_vm2, %v253_v38, 0.0 }
 0x151   : > { %vm255_vm6 = vweird.f32 %v254_v39 }
 0x152   : > { %vm256_vm8 = vmxor %vm255_vm6, %vm366_vm7 }
 0x153   : > { %v257_v40 = vsel %vm256_vm8, %v254_v39, 0.0 }
 0x154   : > { %259 = vst.msk [vmem:[%s182_s5] sm:$0xff] %vm258_vm5, %v257_v40 }
 0x155 PF: > { %s13_s12 = sadd.s32 1, %s362_s12  }
 0x156   : > { %p10_p4 = scmp.ge.s32.totalorder %s13_s12, 4  }
 0x158   :  { %12 = sbr.rel (!%p10_p4) target bundleno = 1 (0x1), region = 65 }

</bundles_post_ra>
